<compile_context>
chip_gen: v6e
topology: v6e:2x2x1
jax: 0.10.0
libtpu: 0.0.40
codegen_flags: <defaults>
</compile_context>

<pallas_src>
import math
from functools import partial

import jax
import jax.numpy as jnp
from jax.experimental import pallas as pl
from jax.experimental.pallas import tpu as pltpu


def _grn_kernel(x_ref, gamma_ref, beta_ref, o_ref, *, k, c):
    # x_ref block: (1, HW/k, k*C)   gamma/beta block: (1, k*C) (pre-tiled k times)
    x = x_ref[0]                                    # (HW/k, k*C), input dtype
    xf = x.astype(jnp.float32)

    # Per-lane sum of squares over the sublane (spatial-row) axis.
    sumsq = jnp.sum(xf * xf, axis=0, keepdims=True)  # (1, k*C), f32

    # Fold the k packed spatial groups into per-channel totals, replicated
    # across all k groups, using lane rotations (XLU; tiny array, ~free).
    # NOTE: pltpu.roll needs a non-negative axis.
    total = sumsq
    for j in range(1, k):
        total = total + pltpu.roll(sumsq, shift=j * c, axis=1)

    # Gx per channel (tiled k times across the lane axis).
    gx = jnp.sqrt(total)                             # (1, k*C)

    # mean over the k*C lanes == mean over the C channels (each appears k times).
    mean_gx = jnp.mean(gx, axis=-1, keepdims=True)   # (1, 1)
    inv = pl.reciprocal(mean_gx + 1e-6, approx=False)
    nx = gx * inv                                    # (1, k*C)

    # Fused per-channel scale:  gamma*(x*Nx) + beta + x == x * (gamma*Nx + 1) + beta
    scale = gamma_ref[...].astype(jnp.float32) * nx + 1.0   # (1, k*C)
    beta = beta_ref[...].astype(jnp.float32)                # (1, k*C)

    if x.dtype == jnp.bfloat16:
        # Keep the bulk tensor in bf16 on bf16-capable VPUs; only the tiny
        # per-channel vectors are cast down.
        out = x * scale.astype(jnp.bfloat16) + beta.astype(jnp.bfloat16)
    else:
        out = xf * scale + beta

    o_ref[0] = out.astype(o_ref.dtype)


def grn_pallas(x, gamma, beta):
    """x: (N, H, W, C); gamma, beta: (C,). Returns (N, H, W, C)."""
    N, H, W, C = x.shape
    HW = H * W

    # Lane packing: choose smallest k with (k*C) % 128 == 0, if HW permits.
    k = 1
    if C % 128 != 0:
        kk = 128 // math.gcd(C, 128)
        if HW % kk == 0 and kk <= 32:
            k = kk
    rows = HW // k
    lanes = k * C

    x2 = x.reshape(N, rows, lanes)
    g2 = jnp.tile(gamma.reshape(1, C), (1, k))   # (1, k*C)
    b2 = jnp.tile(beta.reshape(1, C), (1, k))    # (1, k*C)

    kernel = partial(_grn_kernel, k=k, c=C)

    out = pl.pallas_call(
        kernel,
        out_shape=jax.ShapeDtypeStruct((N, rows, lanes), x.dtype),
        grid_spec=pl.GridSpec(
            grid=(N,),
            in_specs=[
                pl.BlockSpec((1, rows, lanes), lambda i: (i, 0, 0)),
                pl.BlockSpec((1, lanes), lambda i: (0, 0)),
                pl.BlockSpec((1, lanes), lambda i: (0, 0)),
            ],
            out_specs=pl.BlockSpec((1, rows, lanes), lambda i: (i, 0, 0)),
        ),
        compiler_params=pltpu.CompilerParams(
            dimension_semantics=("parallel",),
            vmem_limit_bytes=64 * 1024 * 1024,
        ),
    )(x2, g2, b2)
    return out.reshape(N, H, W, C)


def grn_reference(x, gamma, beta):
    # Pure-JAX reference mirroring the PyTorch forward.
    gx = jnp.sqrt(jnp.sum(x.astype(jnp.float32) ** 2, axis=(1, 2), keepdims=True))
    nx = gx / (jnp.mean(gx, axis=-1, keepdims=True) + 1e-6)
    g = gamma.reshape(1, 1, 1, -1)
    b = beta.reshape(1, 1, 1, -1)
    return (g * (x * nx) + b + x).astype(x.dtype)


if __name__ == "__main__":
    key = jax.random.PRNGKey(0)
    kx, kg, kb = jax.random.split(key, 3)

    N, H, W, C = 2, 16, 16, 32
    x = jax.random.normal(kx, (N, H, W, C), dtype=jnp.float32)
    # Module init is zeros; use deterministic nonzero params so the full
    # compute path (scale + shift + residual) is exercised.
    gamma = 0.1 * jax.random.normal(kg, (C,), dtype=jnp.float32)
    beta = 0.1 * jax.random.normal(kb, (C,), dtype=jnp.float32)

    out = grn_pallas(x, gamma, beta)
    jax.block_until_ready(out)

    ref = grn_reference(x, gamma, beta)
    assert jnp.allclose(out, ref, atol=1e-5, rtol=1e-5), "mismatch vs reference"

    print("KERNEL_OK")
</pallas_src>

<mosaic_0001>
module attributes {stable_mosaic.version = 11 : i64} {
  func.func @_grn_kernel(%arg0: i32, %arg1: memref<1x64x128xf32, #tpu.memory_space<vmem>>, %arg2: memref<1x128xf32, #tpu.memory_space<vmem>>, %arg3: memref<1x128xf32, #tpu.memory_space<vmem>>, %arg4: memref<1x64x128xf32, #tpu.memory_space<vmem>>) attributes {dimension_semantics = [#tpu.dimension_semantics<parallel>], iteration_bounds = array<i64: 2>, scalar_prefetch = 0 : i64, scratch_operands = 0 : i64, tpu.core_type = #tpu.core_type<tc>, window_params = [{transform_indices = @transform_0, window_bounds = array<i64: 1, 64, 128>}, {pipeline_mode = #tpu.pipeline_mode<synchronous>, transform_indices = @transform_1, window_bounds = array<i64: 1, 128>}, {pipeline_mode = #tpu.pipeline_mode<synchronous>, transform_indices = @transform_2, window_bounds = array<i64: 1, 128>}, {transform_indices = @transform_3, window_bounds = array<i64: 1, 64, 128>}]} {
    %c0 = arith.constant 0 : index
    %c0_0 = arith.constant 0 : index
    %c0_1 = arith.constant 0 : index
    %0 = vector.load %arg1[%c0, %c0_0, %c0_1] : memref<1x64x128xf32, #tpu.memory_space<vmem>>, vector<1x64x128xf32>
    %1 = vector.shape_cast %0 : vector<1x64x128xf32> to vector<64x128xf32>
    %2 = arith.mulf %1, %1 : vector<64x128xf32>
    %cst = arith.constant dense<0.000000e+00> : vector<128xf32>
    %3 = vector.multi_reduction <add>, %2, %cst [0] : vector<64x128xf32> to vector<128xf32>
    %4 = vector.shape_cast %3 : vector<128xf32> to vector<1x128xf32>
    %c32_i32 = arith.constant 32 : i32
    %5 = tpu.dynamic_rotate %4 by %c32_i32 dim 1 : vector<1x128xf32>, i32 -> vector<1x128xf32>
    %6 = arith.addf %4, %5 : vector<1x128xf32>
    %c64_i32 = arith.constant 64 : i32
    %7 = tpu.dynamic_rotate %4 by %c64_i32 dim 1 : vector<1x128xf32>, i32 -> vector<1x128xf32>
    %8 = arith.addf %6, %7 : vector<1x128xf32>
    %c96_i32 = arith.constant 96 : i32
    %9 = tpu.dynamic_rotate %4 by %c96_i32 dim 1 : vector<1x128xf32>, i32 -> vector<1x128xf32>
    %10 = arith.addf %8, %9 : vector<1x128xf32>
    %11 = math.sqrt %10 : vector<1x128xf32>
    %cst_2 = arith.constant dense<0.000000e+00> : vector<1xf32>
    %12 = vector.multi_reduction <add>, %11, %cst_2 [1] : vector<1x128xf32> to vector<1xf32>
    %13 = vector.shape_cast %12 : vector<1xf32> to vector<1x1xf32>
    %cst_3 = arith.constant 1.280000e+02 : f32
    %14 = vector.broadcast %cst_3 : f32 to vector<1x1xf32>
    %15 = arith.divf %13, %14 : vector<1x1xf32>
    %cst_4 = arith.constant 9.99999997E-7 : f32
    %16 = vector.broadcast %cst_4 : f32 to vector<1x1xf32>
    %17 = arith.addf %15, %16 : vector<1x1xf32>
    %18 = tpu.reciprocal %17 : vector<1x1xf32> -> vector<1x1xf32>
    %19 = vector.broadcast %18 : vector<1x1xf32> to vector<1x128xf32>
    %20 = arith.mulf %11, %19 : vector<1x128xf32>
    %c0_5 = arith.constant 0 : index
    %c0_6 = arith.constant 0 : index
    %21 = vector.load %arg2[%c0_5, %c0_6] : memref<1x128xf32, #tpu.memory_space<vmem>>, vector<1x128xf32>
    %22 = arith.mulf %21, %20 : vector<1x128xf32>
    %cst_7 = arith.constant 1.000000e+00 : f32
    %23 = vector.broadcast %cst_7 : f32 to vector<1x128xf32>
    %24 = arith.addf %22, %23 : vector<1x128xf32>
    %c0_8 = arith.constant 0 : index
    %c0_9 = arith.constant 0 : index
    %25 = vector.load %arg3[%c0_8, %c0_9] : memref<1x128xf32, #tpu.memory_space<vmem>>, vector<1x128xf32>
    %26 = vector.broadcast %24 : vector<1x128xf32> to vector<64x128xf32>
    %27 = arith.mulf %1, %26 : vector<64x128xf32>
    %28 = vector.broadcast %25 : vector<1x128xf32> to vector<64x128xf32>
    %29 = arith.addf %27, %28 : vector<64x128xf32>
    %c0_10 = arith.constant 0 : index
    %c0_11 = arith.constant 0 : index
    %c0_12 = arith.constant 0 : index
    %30 = vector.load %arg4[%c0_10, %c0_11, %c0_12] : memref<1x64x128xf32, #tpu.memory_space<vmem>>, vector<1x64x128xf32>
    %31 = vector.shape_cast %30 : vector<1x64x128xf32> to vector<64x128xf32>
    %32 = vector.shape_cast %29 : vector<64x128xf32> to vector<1x64x128xf32>
    tpu.vector_store %arg4[%c0_10, %c0_11, %c0_12], %32 {strides = array<i32>} : memref<1x64x128xf32, #tpu.memory_space<vmem>>, vector<1x64x128xf32>,
    return
  }
  func.func @transform_0(%arg0: i32) -> (i32, i32, i32) {
    %c0_i32 = arith.constant 0 : i32
    %c0_i32_0 = arith.constant 0 : i32
    %c0_i32_1 = arith.constant 0 : i32
    return %arg0, %c0_i32, %c0_i32_0 : i32, i32, i32
  }
  func.func @transform_1(%arg0: i32) -> (i32, i32) {
    %c0_i32 = arith.constant 0 : i32
    %c0_i32_0 = arith.constant 0 : i32
    %c0_i32_1 = arith.constant 0 : i32
    return %c0_i32, %c0_i32_0 : i32, i32
  }
  func.func @transform_2(%arg0: i32) -> (i32, i32) {
    %c0_i32 = arith.constant 0 : i32
    %c0_i32_0 = arith.constant 0 : i32
    %c0_i32_1 = arith.constant 0 : i32
    return %c0_i32, %c0_i32_0 : i32, i32
  }
  func.func @transform_3(%arg0: i32) -> (i32, i32, i32) {
    %c0_i32 = arith.constant 0 : i32
    %c0_i32_0 = arith.constant 0 : i32
    %c0_i32_1 = arith.constant 0 : i32
    return %arg0, %c0_i32, %c0_i32_0 : i32, i32, i32
  }
}

</mosaic_0001>

<bundles_post_ra>
// kernel: tpu_custom_call.1
= control target key start
LH: loop header
LB: loop body
LE: loop exit
PB: predicated region body
PF: predicated region fallthrough
CT: control target
= control target key end

     0   :  { %8 = vsyncpa [#allocation3], 0  ;;  %s761_s0 = inlined_call_operand.hbm [shape: f32[2,64,128], index: 0, kind: input, shape index: {}]   ;;  %s762_s1 = inlined_call_operand.vmem [shape: f32[1,128], index: 1, kind: input, shape index: {}]   ;;  %s763_s2 = inlined_call_operand.vmem [shape: f32[1,128], index: 2, kind: input, shape index: {}]   ;;  %s764_s3 = inlined_call_operand.hbm [shape: f32[2,64,128], index: 3, kind: output, shape index: {}]  }
   0x1   :  { %10 = vsyncpa [#allocation3 + $0x1], 0 }
   0x2   :  { %11 = vsyncpa [#allocation4], 0 }
   0x3   :  { %13 = vsyncpa [#allocation4 + $0x1], 0  ;;  %s567_s12 = smov 0   ;;  %s569_s13 = smov 0  }
   0x4   :  { %s571_s14 = smov 0   ;;  %s573_s15 = smov 0  }
   0x5 LB: > { %s588_s16 = sadd.s32 4294967295, %s536_s15   ;;  %s370_s17 = sadd.s32 4294967294, %s536_s15   ;;  %s536_s15 = sphi %s573_s15, %s779_s15   ;;  %s532_s14 = sphi %s571_s14, %s778_s14   ;;  %s528_s13 = sphi %s569_s13, %s777_s13   ;;  %s524_s12 = sphi %s567_s12, %s776_s12  }
   0x6   : > { %s592_s18 = sadd.s32 1, %s536_s15   ;;  %s26_s19 = sadd.s32 1, %s532_s14 }
   0x7   : > { %s23_s20 = ssub.s32 %s536_s15, %s592_s18  ;;  %p33_p0 = scmp.ne.s32.totalorder %s532_s14, %s528_s13 }
   0x8   : > { %p24_p1 = scmp.eq.s32.totalorder %s23_s20, 0  ;;  %p34_p2 = scmp.eq.s32.totalorder %s536_s15, 0 }
   0x9   : > { %p39_p3 = scmp.ne.s32.totalorder %s528_s13, %s524_s12  ;;  %p40_p4 = scmp.eq.s32.totalorder %s588_s16, 0 }
   0xa   : > { %s604_s21 = scalar_select %p24_p1, %s532_s14, %s26_s19  }
   0xb   : > { %p606_p5 = por %p34_p2, %p33_p0  ;;  %p610_p6 = por %p40_p4, %p39_p3 }
   0xc   : > { %p105_p7 = scmp.eq.s32.totalorder %s588_s16, 1  ;;  %p111_p8 = scmp.eq.s32.totalorder %s370_s17, 1 }
   0xd   : > { %s768_s23 = scalar_select %p610_p6, 1, 0 }
   0xe   : > { %p399_p10 = scmp.lt.s32.totalorder %s536_s15, 2  ;;  %p617_p11 = por %p105_p7, %p33_p0 }
   0xf   : > { %p621_p12 = por %p111_p8, %p39_p3  ;;  %s137_s26 = sand.u32 1, %s532_s14  }
  0x10   : > { %s769_s24 = scalar_select %p617_p11, 1, 0 }
  0x11   : > { %s770_s25 = scalar_select %p621_p12, 1, 0 }
  0x12   : > { %s385_s27 = sshll.u32 %s536_s15, 10  ;;  %s373_s28 = sshll.u32 %s137_s26, 6 }
  0x13   : > { %s630_s4 = scalar_lea.hbm %s761_s0, %s385_s27  ;;  %s141_s5 = scalar_lea.vmem [#allocation2], %s373_s28 }
  0x14   : > { %s148_s6 = sshll.u32 %s141_s5, 4  ;;  %p634_p13 = pnand %p399_p10, %p606_p5  ;;  %s638_s6 = int_to_ptr.vmem [resolvable:$true] %s148_s6 }
  0x15   : > { %s640_s8 = scalar_lea.sflag [#allocation3], %s137_s26  ;;  %s444_s9 = scalar_lea.hbm %s630_s4, 1024 }
  0x16   : > { %p445_p0 = scmp.ne.s32.totalorder %s630_s4, %s444_s9  ;;  %p446_p1 = pneg %p634_p13 }
  0x17   : > { %s449_s17 = scalar_lea.hbm %s761_s0, 2048  ;;  %p450_p4 = scmp.lt.s32.totalorder %s630_s4, %s761_s0 }
  0x18   : > { %p447_p2 = pnand %p446_p1, %p445_p0  ;;  %p451_p5 = scmp.lt.s32.totalorder %s449_s17, %s444_s9 }
  0x1a   : > { %p448_p3 = pneg %p447_p2  ;;  %p452_p7 = por %p451_p5, %p450_p4 }
  0x1c   : > { %p453_p8 = pnand %p452_p7, %p448_p3 }
  0x1e   : > { %456 = shalt.err (!%p453_p8)
}
  0x1f   : > { %s457_s22 = scalar_lea.vmem %s638_s6, 1024  ;;  %s538_s26 = smov [#allocation2]  }
  0x20   : > { %p458_p10 = scmp.ne.s32.totalorder %s638_s6, %s457_s22  ;;  %s462_s27 = sshll.u32 %s538_s26, 4  ;;  %s463_s27 = int_to_ptr.vmem [resolvable:$false] %s462_s27 }
  0x21   : > { %s464_s28 = scalar_lea.vmem %s463_s27, 2048  ;;  %p465_p2 = scmp.lt.s32.totalorder %s638_s6, %s463_s27 }
  0x22   : > { %p460_p9 = pnand %p458_p10, %p446_p1  ;;  %p466_p12 = scmp.lt.s32.totalorder %s464_s28, %s457_s22 }
  0x24   : > { %p461_p0 = pneg %p460_p9  ;;  %p467_p11 = por %p466_p12, %p465_p2 }
  0x26   : > { %p468_p6 = pnand %p467_p11, %p461_p0 }
  0x28   : > { %471 = shalt.err (!%p468_p6)
}
  0x29   : > { %s539_s29 = smov 128   ;;  %s540_s30 = smov 8  }
  0x2a   : > { %394 = dma.hbm_to_vmem [thread:$0]  (!%p634_p13), %s630_s4, 1024, %s638_s6, %s640_s8, %s539_s29, %s539_s29, %s540_s30  }
  0x2b   : > { %p376_p9 = scmp.ge.s32.totalorder %s536_s15, 1  ;;  %p156_p1 = scmp.lt.s32.totalorder %s536_s15, 3 }
  0x2d   : > { %p157_p3 = pnand %p376_p9, %p156_p1 }
  0x2e   : > { %s664_s5 = sand.u32 (!%p157_p3), 1, %s528_s13   ;;  %p772_p6 = scmp.ne.s32.totalorder (!%p157_p3), %s768_s23, 0 }
  0x2f   : > { %160 = sbr.rel (%p157_p3) target bundleno = 409 (0x199), region = 32  ;;  %s377_s9 = sshll.u32 (!%p157_p3), %s664_s5, 6 }
  0x30   : > { %s163_s10 = scalar_lea.sflag (!%p157_p3), [#allocation3], %s664_s5  ;;  %s166_s11 = scalar_lea.vmem (!%p157_p3), [#allocation2], %s377_s9 }
  0x34   : > { %515 = dma.done.wait (%p772_p6), %s163_s10, 1024  }
  0x35   : > { %517 = vsyncadd (%p772_p6), %s163_s10, 4294966272  ;;  %v674_v0 = vld [vmem:[%s166_s11] sm:$0xff]  ;;  %v676_v1 = vld [vmem:[%s166_s11 + $0x8] sm:$0xff]  ;;  %s541_s23 = smov 32   ;;  %s542_s4 = smov 96   ;;  %vm234_vm1 = vcmask 1040384   ;;  %v248_v44 = vlaneseq }
  0x36   : > { %v678_v2 = vld [vmem:[%s166_s11 + $0x10] sm:$0xff]  ;;  %v680_v3 = vld [vmem:[%s166_s11 + $0x18] sm:$0xff]  ;;  %v197_v4 = vmul.f32 %v674_v0, %v674_v0  ;;  %v198_v5 = vmul.f32 %v676_v1, %v676_v1  ;;  %v688_v7 = vld [vmem:[%s166_s11 + $0x20] sm:$0xff]  ;;  %s543_s6 = smov 64   ;;  %s386_s20 = sshll.u32 %s588_s16, 10 }
  0x37   : > { %v199_v6 = vmul.f32 %v678_v2, %v678_v2  ;;  %v200_v8 = vmul.f32 %v680_v3, %v680_v3  ;;  %v692_v10 = vld [vmem:[%s166_s11 + $0x28] sm:$0xff]  ;;  %v201_v11 = vmul.f32 %v688_v7, %v688_v7  ;;  %v195_v13 = vld [vmem:[%s166_s11 + $0x30] sm:$0xff]  ;;  %v196_v16 = vld [vmem:[%s166_s11 + $0x38] sm:$0xff]  ;;  %v249_v45 = vshrl.u32 %v248_v44, 7  ;;  %s188_s22 = scalar_lea.vmem [#allocation5], %s377_s9  ;;  %s716_s28 = scalar_lea.hbm %s764_s3, %s386_s20 }
  0x38   : > { %v205_v9 = vadd.f32 %v198_v5, %v197_v4  ;;  %v202_v14 = vmul.f32 %v692_v10, %v692_v10  ;;  %v203_v17 = vmul.f32 %v195_v13, %v195_v13  ;;  %v204_v19 = vmul.f32 %v196_v16, %v196_v16  ;;  %v243_v47 = vld [vmem:[%s762_s1] sm:$0x1]  ;;  %s297_s26 = sshll.u32 %s188_s22, 4  ;;  %s284_s29 = scalar_lea.sflag [#allocation4], %s664_s5  ;;  %s718_s26 = int_to_ptr.vmem [resolvable:$true] %s297_s26 }
  0x39   : > { %v250_v49 = vsub.s32 0, %v249_v45  ;;  %v379_v53 = vld [vmem:[%s763_s2] ss:$0 sm:$0xff]  ;;  %s472_s30 = scalar_lea.vmem %s718_s26, 1024  ;;  %p773_p12 = scmp.ne.s32.totalorder %s769_s24, 0 }
  0x3a   : > { %v206_v12 = vadd.f32 %v205_v9, %v199_v6  ;;  %p473_p11 = scmp.ne.s32.totalorder %s718_s26, %s472_s30  ;;  %s544_s9 = smov [#allocation5]  }
  0x3b   : > { %s476_s10 = sshll.u32 %s544_s9, 4  ;;  %s477_s10 = int_to_ptr.vmem [resolvable:$false] %s476_s10 }
  0x3c   : > { %v207_v15 = vadd.f32 %v206_v12, %v200_v8  ;;  %p474_p13 = pnand %p473_p11, %p773_p12  ;;  %s478_s11 = scalar_lea.vmem %s477_s10, 2048 }
  0x3d   : > { %p479_p5 = scmp.lt.s32.totalorder %s718_s26, %s477_s10  ;;  %p480_p7 = scmp.lt.s32.totalorder %s478_s11, %s472_s30 }
  0x3e   : > { %v208_v18 = vadd.f32 %v207_v15, %v201_v11  ;;  %p475_p4 = pneg %p474_p13 }
  0x3f   : > { %p481_p8 = por %p480_p7, %p479_p5 }
  0x40   : > { %v209_v20 = vadd.f32 %v208_v18, %v202_v14 }
  0x41   : > { %p482_p10 = pnand %p481_p8, %p475_p4 }
  0x42   : > { %v210_v21 = vadd.f32 %v209_v20, %v203_v17 }
  0x44   : > { %v211_v22 = vadd.f32 %v210_v21, %v204_v19 }
  0x46   : > { %v212_v23 = vrot.slane %v211_v22, 4 }
  0x48   : > { %v213_v24 = vadd.f32 %v212_v23, %v211_v22 }
  0x4a   : > { %v214_v25 = vrot.slane %v213_v24, 2 }
  0x4c   : > { %v215_v26 = vadd.f32 %v214_v25, %v213_v24 }
  0x4e   : > { %v216_v27 = vrot.slane %v215_v26, 1 }
  0x50   : > { %v217_v28 = vadd.f32 %v216_v27, %v215_v26 }
  0x52   : > { %218 = vrot.lane.b32.xlu0 %v217_v28, %s541_s23  ;;  %224 = vrot.lane.b32.xlu1 %v217_v28, %s542_s4 }
  0x56   : > { %221 = vrot.lane.b32.xlu0 %v217_v28, %s543_s6 }
  0xc4   : > { %v219_v29 = vpop.permute.xlu0 %218  ;;  %v225_v32 = vpop.permute.xlu1 %224 }
  0xc5   : > { %v220_v30 = vadd.f32 %v219_v29, %v217_v28 }
  0xc8   : > { %v222_v31 = vpop.permute.xlu0 %221 }
  0xc9   : > { %v223_v33 = vadd.f32 %v222_v31, %v220_v30 }
  0xcb   : > { %v226_v34 = vadd.f32 %v225_v32, %v223_v33 }
  0xcd   : > { %440 = vrsqrt.f32 %v226_v34  ;;  %vm229_vm0 = vcmp.eq.f32.partialorder %v226_v34, inf  ;;  %v232_v37 = vand.u32 2147483648, %v226_v34  ;;  %vm231_vm2 = vcmp.eq.f32.partialorder %v226_v34, 0.0 }
  0xda   : > { %v441_v35 = vpop.eup %440 }
  0xdb   : > { %v228_v36 = vmul.f32 %v441_v35, %v226_v34 }
  0xdd   : > { %v230_v38 = vsel %vm229_vm0, %v226_v34, %v228_v36 }
  0xde   : > { %v233_v39 = vsel %vm231_vm2, %v232_v37, %v230_v38 }
  0xdf   : > { %v235_v40 = vsel %vm234_vm1, %v233_v39, 0.0 }
  0xe0   : > { %236 = vadd.xlane.f32.xlu1 %v235_v40 }
 0x169   : > { %v237_v41 = vpop.xlane.xlu1 %236 }
 0x16a   : > { %v239_v42 = vmul.f32 0.0078125, %v237_v41 }
 0x16c   : > { %v240_v43 = vadd.f32 1e-06, %v239_v42 }
 0x16e   : > { %442 = vrcp.f32 %v240_v43 }
 0x17b   : > { %v443_v46 = vpop.eup %442 }
 0x17c   : > { %v242_v48 = vmul.f32 %v443_v46, %v233_v39 }
 0x17e   : > { %v244_v50 = vmul.f32 %v243_v47, %v242_v48 }
 0x180   : > { %v245_v51 = vadd.f32 1.0, %v244_v50 }
 0x182   : > { %v251_v52 = vrot.slane %v245_v51, %v250_v49 }
 0x184   : > { %v253_v54 = vmul.f32 %v251_v52, %v674_v0  ;;  %v254_v55 = vmul.f32 %v251_v52, %v676_v1  ;;  %v255_v56 = vmul.f32 %v251_v52, %v678_v2  ;;  %v256_v57 = vmul.f32 %v251_v52, %v680_v3 }
 0x185   : > { %v257_v58 = vmul.f32 %v251_v52, %v688_v7  ;;  %v258_v59 = vmul.f32 %v251_v52, %v692_v10  ;;  %v259_v60 = vmul.f32 %v251_v52, %v195_v13  ;;  %v260_v61 = vmul.f32 %v251_v52, %v196_v16 }
 0x186   : > { %v267_v62 = vadd.f32 %v379_v53, %v253_v54  ;;  %v268_v63 = vadd.f32 %v379_v53, %v254_v55  ;;  %v269_v4 = vadd.f32 %v379_v53, %v255_v56  ;;  %v270_v5 = vadd.f32 %v379_v53, %v256_v57 }
 0x187   : > { %v271_v0 = vadd.f32 %v379_v53, %v257_v58  ;;  %v272_v1 = vadd.f32 %v379_v53, %v258_v59  ;;  %v273_v2 = vadd.f32 %v379_v53, %v259_v60  ;;  %v274_v3 = vadd.f32 %v379_v53, %v260_v61 }
 0x188   : > { %275 = vst [vmem:[%s188_s22] sm:$0xff] %v267_v62  ;;  %276 = vst [vmem:[%s188_s22 + $0x8] sm:$0xff] %v268_v63 }
 0x189   : > { %277 = vst [vmem:[%s188_s22 + $0x10] sm:$0xff] %v269_v4  ;;  %278 = vst [vmem:[%s188_s22 + $0x18] sm:$0xff] %v270_v5 }
 0x18a   : > { %279 = vst [vmem:[%s188_s22 + $0x20] sm:$0xff] %v271_v0  ;;  %280 = vst [vmem:[%s188_s22 + $0x28] sm:$0xff] %v272_v1 }
 0x18b   : > { %281 = vst [vmem:[%s188_s22 + $0x30] sm:$0xff] %v273_v2  ;;  %282 = vst [vmem:[%s188_s22 + $0x38] sm:$0xff] %v274_v3 }
 0x18c   : > { %485 = shalt.err (!%p482_p10)
}
 0x18d   : > { %s486_s23 = scalar_lea.hbm %s716_s28, 1024  ;;  %s490_s7 = scalar_lea.hbm %s764_s3, 2048 }
 0x18e   : > { %p487_p0 = scmp.ne.s32.totalorder %s716_s28, %s486_s23  ;;  %p491_p1 = scmp.lt.s32.totalorder %s716_s28, %s764_s3 }
 0x18f   : > { %p492_p3 = scmp.lt.s32.totalorder %s490_s7, %s486_s23 }
 0x190   : > { %p488_p2 = pnand %p487_p0, %p773_p12 }
 0x191   : > { %p493_p6 = por %p492_p3, %p491_p1 }
 0x192   : > { %p489_p9 = pneg %p488_p2 }
 0x194   : > { %p494_p11 = pnand %p493_p6, %p489_p9 }
 0x196   : > { %497 = shalt.err (!%p494_p11)
}
 0x197   : > { %s545_s19 = smov 128   ;;  %s546_s20 = smov 8  }
 0x198   : > { %389 = dma.vmem_to_hbm [thread:$0]  (%p773_p12), %s718_s26, 1024, %s716_s28, %s284_s29, %s545_s19, %s545_s19, %s546_s20  }
 0x199 PF: > { %s312_s22 = sand.u32 1, %s524_s12   ;;  %p774_p13 = scmp.ne.s32.totalorder %s770_s25, 0 }
 0x19a   : > { %p775_p4 = scmp.ge.s32.totalorder %s536_s15, 2  ;;  %s313_s16 = scalar_lea.sflag [#allocation4], %s312_s22 }
 0x19c   : > { %p396_p5 = pnand %p775_p4, %p774_p13 }
 0x19e   : > { %p397_p7 = pneg %p396_p5 }
 0x1a0   : > { %519 = dma.done.wait (%p397_p7), %s313_s16, 1024  }
 0x1a1   : > { %521 = vsyncadd (%p397_p7), %s313_s16, 4294966272  ;;  %p16_p8 = scmp.ge.s32.totalorder %s592_s18, 4   ;;  %s776_s12 = smov %s528_s13 }
 0x1a2   : > { %s777_s13 = smov %s532_s14  ;;  %s778_s14 = smov %s604_s21 }
 0x1a3   : > { %s779_s15 = smov %s592_s18  ;;  %18 = sbr.rel (!%p16_p8) target bundleno = 5 (0x5), region = 77 }
 0x1a8   :  { %318 = vsyncpa [#allocation3], 1 }
 0x1a9   :  { %320 = vsyncpa [#allocation3 + $0x1], 1 }
 0x1aa   :  { %321 = vsyncpa [#allocation4], 1 }
 0x1ab   :  { %323 = vsyncpa [#allocation4 + $0x1], 1 }

</bundles_post_ra>
